<compile_context>
chip_gen: v5e
topology: v5e:2x2
jax: 0.10.0
libtpu: 0.0.40
codegen_flags: <defaults>
</compile_context>

<pallas_src>
import functools
import math

import jax
import jax.numpy as jnp
import numpy as np
from jax.experimental import pallas as pl
from jax.experimental.pallas import tpu as pltpu

EPS = 1e-5        # nn.BatchNorm1d default eps
# MOMENTUM (0.01) only affects the running-stat EMA state update, not the returned tensor.


def _round_up(x: int, m: int) -> int:
    return ((x + m - 1) // m) * m


# --------------------------------------------------------------------------- #
# Fused kernel: grid = (pass, batch_tile)                                      #
#   pass 0: accumulate sum / sumsq, finalize BN scale/shift into VMEM scratch  #
#   pass 1: normalize + Linear + Sigmoid, lane-dense output                    #
# --------------------------------------------------------------------------- #
def _fused_kernel(x_ref, z_ref, w_enc_ref, b_enc_ref, gamma_ref, beta_ref,
                  w_ref, b_ref, y_ref, acc_ref, ss_ref, *, true_b: int, tb: int):
    p = pl.program_id(0)          # 0 = stats pass, 1 = decode pass
    i = pl.program_id(1)          # batch tile index
    nb = pl.num_programs(1)

    # Recompute the embedding tile in VMEM (encoder matmul + concat). Cheaper than
    # materializing a (B, D) slab in HBM and reading it twice.
    # TODO(synk): data_encoder is an arbitrary injected nn.Module in the reference;
    # modeled here as a single linear projection (placeholder).
    x_emb = jnp.dot(x_ref[...], w_enc_ref[...],
                    preferred_element_type=jnp.float32) + b_enc_ref[...]
    emb = jnp.concatenate([x_emb, z_ref[...]], axis=-1)        # (tb, D)

    @pl.when(p == 0)
    def _stats_pass():
        @pl.when(i == 0)
        def _init():
            acc_ref[...] = jnp.zeros_like(acc_ref)

        # Zero-padded batch rows: x rows are zero but the encoder bias would leak
        # into the statistics, so mask rows >= true_b explicitly.
        row = jax.lax.broadcasted_iota(jnp.int32, emb.shape, 0) + i * tb
        e = jnp.where(row < true_b, emb, 0.0)
        acc_ref[0:1, :] += jnp.sum(e, axis=0, keepdims=True)          # sum_x
        acc_ref[1:2, :] += jnp.sum(e * e, axis=0, keepdims=True)      # sum_x2

        @pl.when(i == nb - 1)
        def _finalize():
            inv_n = 1.0 / float(true_b)
            mean = acc_ref[0:1, :] * inv_n
            var = acc_ref[1:2, :] * inv_n - mean * mean               # biased (training mode)
            # TODO(synk): E[x^2]-E[x]^2 can cancel for features with mean >> spread;
            # fine here, use a pivoted accumulation if real data has large offsets.
            scale = jax.lax.rsqrt(var + EPS) * gamma_ref[...]
            ss_ref[0:1, :] = scale
            ss_ref[1:2, :] = beta_ref[...] - mean * scale

    @pl.when(p == 1)
    def _decode_pass():
        norm = emb * ss_ref[0:1, :] + ss_ref[1:2, :]                  # BN affine folded in
        # Keep the matmul in f32 to stay within tight validation tolerance
        # (bf16 cast is a valid secondary win at looser tolerances).
        logits = jnp.dot(norm, w_ref[...], preferred_element_type=jnp.float32)
        logits = logits + b_ref[...]
        y_ref[...] = jax.nn.sigmoid(logits).astype(y_ref.dtype)


# --------------------------------------------------------------------------- #
# Wrapper                                                                      #
# --------------------------------------------------------------------------- #
def mlc_decoder_y(params, x, z, *, block_b: int = 1024):
    """Pallas implementation of MlcDecoderY.forward(x, z)."""
    x = x.astype(jnp.float32)
    z = z.astype(jnp.float32)
    B, X_DIM = x.shape
    LATENT = z.shape[1]
    D_EMB = params['w_enc'].shape[1]
    D = D_EMB + LATENT
    NL = params['w'].shape[1]

    # Large batch tiles (multiple of 8) to amortize the ~0.35 us/step pipeline overhead.
    tb = min(_round_up(block_b, 8), _round_up(B, 8))
    Bp = _round_up(B, tb)
    if Bp != B:
        # Padded rows are masked out of the statistics in-kernel; padded outputs sliced off.
        x = jnp.pad(x, ((0, Bp - B), (0, 0)))
        z = jnp.pad(z, ((0, Bp - B), (0, 0)))
    nb = Bp // tb

    # Lane-dense output: pad n_labels to a multiple of 128 with zero weight/bias columns.
    NLp = _round_up(NL, 128)
    w = params['w'].astype(jnp.float32)
    b = params['b'].reshape(1, NL).astype(jnp.float32)
    if NLp != NL:
        w = jnp.pad(w, ((0, 0), (0, NLp - NL)))
        b = jnp.pad(b, ((0, 0), (0, NLp - NL)))

    w_enc = params['w_enc'].astype(jnp.float32)
    b_enc = params['b_enc'].reshape(1, D_EMB).astype(jnp.float32)
    gamma = params['gamma'].reshape(1, D).astype(jnp.float32)
    beta = params['beta'].reshape(1, D).astype(jnp.float32)

    kernel = functools.partial(_fused_kernel, true_b=B, tb=tb)

    y = pl.pallas_call(
        kernel,
        out_shape=jax.ShapeDtypeStruct((Bp, NLp), jnp.float32),
        grid_spec=pltpu.PrefetchScalarGridSpec(
            num_scalar_prefetch=0,
            grid=(2, nb),                                   # (pass, batch tile)
            in_specs=[
                pl.BlockSpec((tb, X_DIM), lambda p, i: (i, 0)),     # x tile
                pl.BlockSpec((tb, LATENT), lambda p, i: (i, 0)),    # z tile
                pl.BlockSpec((X_DIM, D_EMB), lambda p, i: (0, 0)),  # encoder weight (resident)
                pl.BlockSpec((1, D_EMB), lambda p, i: (0, 0)),      # encoder bias
                pl.BlockSpec((1, D), lambda p, i: (0, 0)),          # gamma
                pl.BlockSpec((1, D), lambda p, i: (0, 0)),          # beta
                pl.BlockSpec((D, NLp), lambda p, i: (0, 0)),        # decoder weight (padded)
                pl.BlockSpec((1, NLp), lambda p, i: (0, 0)),        # decoder bias (padded)
            ],
            # During pass 0 the output block index stays pinned at 0 (never written,
            # never flushed); pass 1 visits each batch tile exactly once.
            out_specs=pl.BlockSpec((tb, NLp), lambda p, i: (i * p, 0)),
            scratch_shapes=[pltpu.VMEM((2, D), jnp.float32),        # sum / sumsq accumulator
                            pltpu.VMEM((2, D), jnp.float32)],       # folded BN scale / shift
        ),
        compiler_params=pltpu.CompilerParams(
            # Pass 0 reduces over the batch axis into scratch, so both axes are sequential.
            dimension_semantics=("arbitrary", "arbitrary"),
            vmem_limit_bytes=64 << 20,   # headroom for tb up to ~2048 on any generation
        ),
    )(x, z, w_enc, b_enc, gamma, beta, w, b)

    # TODO(synk): BatchNorm1d running_mean/running_var EMA updates (MOMENTUM=0.01) are a
    # training-state side effect and are not materialized here.
    return y[:B, :NL]


# --------------------------------------------------------------------------- #
# Plain-JAX reference for validation                                           #
# --------------------------------------------------------------------------- #
def _reference(params, x, z):
    x_emb = x @ params['w_enc'] + params['b_enc']
    emb = jnp.concatenate([x_emb, z], axis=-1)
    mean = jnp.mean(emb, axis=0, keepdims=True)
    var = jnp.mean(jnp.square(emb - mean), axis=0, keepdims=True)   # biased (training mode)
    norm = (emb - mean) / jnp.sqrt(var + EPS)
    norm = norm * params['gamma'].reshape(1, -1) + params['beta'].reshape(1, -1)
    logits = norm @ params['w'] + params['b'].reshape(1, -1)
    return jax.nn.sigmoid(logits)


if __name__ == "__main__":
    B, X_DIM, DATA_EMB, LATENT, N_LABELS = 16, 32, 96, 32, 16
    D = DATA_EMB + LATENT                                   # 128 -> lane-dense slab

    key = jax.random.PRNGKey(0)
    ks = jax.random.split(key, 8)
    params = {
        'w_enc': jax.random.normal(ks[0], (X_DIM, DATA_EMB), jnp.float32) / math.sqrt(X_DIM),
        'b_enc': 0.1 * jax.random.normal(ks[1], (DATA_EMB,), jnp.float32),
        'gamma': 1.0 + 0.1 * jax.random.normal(ks[2], (D,), jnp.float32),
        'beta': 0.1 * jax.random.normal(ks[3], (D,), jnp.float32),
        'w': jax.random.normal(ks[4], (D, N_LABELS), jnp.float32) / math.sqrt(D),
        'b': 0.1 * jax.random.normal(ks[5], (N_LABELS,), jnp.float32),
    }
    x = jax.random.normal(ks[6], (B, X_DIM), jnp.float32)
    z = jax.random.normal(ks[7], (B, LATENT), jnp.float32)

    # Small block to exercise the multi-tile accumulation path (grid = (2, 2)).
    y = mlc_decoder_y(params, x, z, block_b=8)
    y = jax.block_until_ready(y)

    ref = _reference(params, x, z)
    assert y.shape == (B, N_LABELS), y.shape
    max_err = np.max(np.abs(np.asarray(y) - np.asarray(ref)))
    assert np.allclose(np.asarray(y), np.asarray(ref), rtol=1e-4, atol=2e-5), max_err

    # Also run the default (single large tile) configuration.
    y2 = jax.block_until_ready(mlc_decoder_y(params, x, z))
    assert np.allclose(np.asarray(y2), np.asarray(ref), rtol=1e-4, atol=2e-5)

    print("KERNEL_OK")
</pallas_src>

<mosaic_0001>
module attributes {stable_mosaic.version = 11 : i64} {
  func.func @_fused_kernel(%arg0: i32, %arg1: i32, %arg2: memref<8x32xf32, #tpu.memory_space<vmem>>, %arg3: memref<8x32xf32, #tpu.memory_space<vmem>>, %arg4: memref<32x96xf32, #tpu.memory_space<vmem>>, %arg5: memref<1x96xf32, #tpu.memory_space<vmem>>, %arg6: memref<1x128xf32, #tpu.memory_space<vmem>>, %arg7: memref<1x128xf32, #tpu.memory_space<vmem>>, %arg8: memref<128x128xf32, #tpu.memory_space<vmem>>, %arg9: memref<1x128xf32, #tpu.memory_space<vmem>>, %arg10: memref<8x128xf32, #tpu.memory_space<vmem>>, %arg11: memref<2x128xf32, #tpu.memory_space<vmem>>, %arg12: memref<2x128xf32, #tpu.memory_space<vmem>>) attributes {dimension_semantics = [#tpu.dimension_semantics<arbitrary>, #tpu.dimension_semantics<arbitrary>], iteration_bounds = array<i64: 2, 2>, scalar_prefetch = 0 : i64, scratch_operands = 2 : i64, tpu.core_type = #tpu.core_type<tc>, window_params = [{transform_indices = @transform_0, window_bounds = array<i64: 8, 32>}, {transform_indices = @transform_1, window_bounds = array<i64: 8, 32>}, {pipeline_mode = #tpu.pipeline_mode<synchronous>, transform_indices = @transform_2, window_bounds = array<i64: 32, 96>}, {pipeline_mode = #tpu.pipeline_mode<synchronous>, transform_indices = @transform_3, window_bounds = array<i64: 1, 96>}, {pipeline_mode = #tpu.pipeline_mode<synchronous>, transform_indices = @transform_4, window_bounds = array<i64: 1, 128>}, {pipeline_mode = #tpu.pipeline_mode<synchronous>, transform_indices = @transform_5, window_bounds = array<i64: 1, 128>}, {pipeline_mode = #tpu.pipeline_mode<synchronous>, transform_indices = @transform_6, window_bounds = array<i64: 128, 128>}, {pipeline_mode = #tpu.pipeline_mode<synchronous>, transform_indices = @transform_7, window_bounds = array<i64: 1, 128>}, {transform_indices = @transform_8, window_bounds = array<i64: 8, 128>}]} {
    %c0 = arith.constant 0 : index
    %c0_0 = arith.constant 0 : index
    %0 = vector.load %arg2[%c0, %c0_0] : memref<8x32xf32, #tpu.memory_space<vmem>>, vector<8x32xf32>
    %c0_1 = arith.constant 0 : index
    %c0_2 = arith.constant 0 : index
    %1 = vector.load %arg4[%c0_1, %c0_2] : memref<32x96xf32, #tpu.memory_space<vmem>>, vector<32x96xf32>
    %cst = arith.constant dense<0.000000e+00> : vector<8x96xf32>
    %2 = tpu.matmul %0, %1, %cst {dimension_numbers = #tpu.dot_dimension_numbers<[1], [0], [0], [1], [0, 0, 1, 1], [], []>} : vector<8x32xf32>, vector<32x96xf32>, vector<8x96xf32> -> vector<8x96xf32>
    %c0_3 = arith.constant 0 : index
    %c0_4 = arith.constant 0 : index
    %3 = vector.load %arg5[%c0_3, %c0_4] : memref<1x96xf32, #tpu.memory_space<vmem>>, vector<1x96xf32>
    %4 = vector.broadcast %3 : vector<1x96xf32> to vector<8x96xf32>
    %5 = arith.addf %2, %4 : vector<8x96xf32>
    %c0_5 = arith.constant 0 : index
    %c0_6 = arith.constant 0 : index
    %6 = vector.load %arg3[%c0_5, %c0_6] : memref<8x32xf32, #tpu.memory_space<vmem>>, vector<8x32xf32>
    %7 = tpu.concatenate %5, %6 in 1 : vector<8x96xf32>, vector<8x32xf32> -> vector<8x128xf32>
    %c0_i32 = arith.constant 0 : i32
    %8 = arith.cmpi eq, %arg0, %c0_i32 : i32
    %9 = arith.extui %8 : i1 to i32
    %c0_i32_7 = arith.constant 0 : i32
    %10 = arith.cmpi ne, %9, %c0_i32_7 : i32
    scf.if %10 {
      %c0_i32_9 = arith.constant 0 : i32
      %14 = arith.cmpi eq, %arg1, %c0_i32_9 : i32
      %15 = arith.extui %14 : i1 to i32
      %c0_i32_10 = arith.constant 0 : i32
      %16 = arith.cmpi ne, %15, %c0_i32_10 : i32
      scf.if %16 {
        %cst_23 = arith.constant 0.000000e+00 : f32
        %39 = vector.broadcast %cst_23 : f32 to vector<2x128xf32>
        %c0_24 = arith.constant 0 : index
        %c0_25 = arith.constant 0 : index
        %40 = vector.load %arg11[%c0_24, %c0_25] : memref<2x128xf32, #tpu.memory_space<vmem>>, vector<2x128xf32>
        tpu.vector_store %arg11[%c0_24, %c0_25], %39 {strides = array<i32>} : memref<2x128xf32, #tpu.memory_space<vmem>>, vector<2x128xf32>,
      } else {
      }
      %17 = tpu.iota {dimensions = array<i32: 0>} : vector<8x128xi32>
      %c8_i32 = arith.constant 8 : i32
      %18 = arith.muli %arg1, %c8_i32 : i32
      %19 = vector.broadcast %18 : i32 to vector<8x128xi32>
      %20 = arith.addi %17, %19 : vector<8x128xi32>
      %c16_i32 = arith.constant 16 : i32
      %21 = vector.broadcast %c16_i32 : i32 to vector<8x128xi32>
      %22 = arith.cmpi slt, %20, %21 : vector<8x128xi32>
      %cst_11 = arith.constant 0.000000e+00 : f32
      %23 = vector.broadcast %cst_11 : f32 to vector<8x128xf32>
      %24 = arith.select %22, %7, %23 : vector<8x128xi1>, vector<8x128xf32>
      %c0_12 = arith.constant 0 : index
      %c0_13 = arith.constant 0 : index
      %25 = vector.load %arg11[%c0_12, %c0_13] : memref<2x128xf32, #tpu.memory_space<vmem>>, vector<1x128xf32>
      %cst_14 = arith.constant dense<0.000000e+00> : vector<128xf32>
      %26 = vector.multi_reduction <add>, %24, %cst_14 [0] : vector<8x128xf32> to vector<128xf32>
      %27 = vector.shape_cast %26 : vector<128xf32> to vector<1x128xf32>
      %28 = arith.addf %25, %27 : vector<1x128xf32>
      %c0_15 = arith.constant 0 : index
      %c0_16 = arith.constant 0 : index
      %29 = vector.load %arg11[%c0_15, %c0_16] : memref<2x128xf32, #tpu.memory_space<vmem>>, vector<1x128xf32>
      tpu.vector_store %arg11[%c0_15, %c0_16], %28 {strides = array<i32>} : memref<2x128xf32, #tpu.memory_space<vmem>>, vector<1x128xf32>,
      %c1 = arith.constant 1 : index
      %c0_17 = arith.constant 0 : index
      %30 = vector.load %arg11[%c1, %c0_17] : memref<2x128xf32, #tpu.memory_space<vmem>>, vector<1x128xf32>
      %31 = arith.mulf %24, %24 : vector<8x128xf32>
      %cst_18 = arith.constant dense<0.000000e+00> : vector<128xf32>
      %32 = vector.multi_reduction <add>, %31, %cst_18 [0] : vector<8x128xf32> to vector<128xf32>
      %33 = vector.shape_cast %32 : vector<128xf32> to vector<1x128xf32>
      %34 = arith.addf %30, %33 : vector<1x128xf32>
      %c1_19 = arith.constant 1 : index
      %c0_20 = arith.constant 0 : index
      %35 = vector.load %arg11[%c1_19, %c0_20] : memref<2x128xf32, #tpu.memory_space<vmem>>, vector<1x128xf32>
      tpu.vector_store %arg11[%c1_19, %c0_20], %34 {strides = array<i32>} : memref<2x128xf32, #tpu.memory_space<vmem>>, vector<1x128xf32>,
      %c1_i32_21 = arith.constant 1 : i32
      %36 = arith.cmpi eq, %arg1, %c1_i32_21 : i32
      %37 = arith.extui %36 : i1 to i32
      %c0_i32_22 = arith.constant 0 : i32
      %38 = arith.cmpi ne, %37, %c0_i32_22 : i32
      scf.if %38 {
        %c0_23 = arith.constant 0 : index
        %c0_24 = arith.constant 0 : index
        %39 = vector.load %arg11[%c0_23, %c0_24] : memref<2x128xf32, #tpu.memory_space<vmem>>, vector<1x128xf32>
        %cst_25 = arith.constant 6.250000e-02 : f32
        %40 = vector.broadcast %cst_25 : f32 to vector<1x128xf32>
        %41 = arith.mulf %39, %40 : vector<1x128xf32>
        %c1_26 = arith.constant 1 : index
        %c0_27 = arith.constant 0 : index
        %42 = vector.load %arg11[%c1_26, %c0_27] : memref<2x128xf32, #tpu.memory_space<vmem>>, vector<1x128xf32>
        %cst_28 = arith.constant 6.250000e-02 : f32
        %43 = vector.broadcast %cst_28 : f32 to vector<1x128xf32>
        %44 = arith.mulf %42, %43 : vector<1x128xf32>
        %45 = arith.mulf %41, %41 : vector<1x128xf32>
        %46 = arith.subf %44, %45 : vector<1x128xf32>
        %cst_29 = arith.constant 9.99999974E-6 : f32
        %47 = vector.broadcast %cst_29 : f32 to vector<1x128xf32>
        %48 = arith.addf %46, %47 : vector<1x128xf32>
        %49 = math.rsqrt %48 : vector<1x128xf32>
        %c0_30 = arith.constant 0 : index
        %c0_31 = arith.constant 0 : index
        %50 = vector.load %arg6[%c0_30, %c0_31] : memref<1x128xf32, #tpu.memory_space<vmem>>, vector<1x128xf32>
        %51 = arith.mulf %49, %50 : vector<1x128xf32>
        %c0_32 = arith.constant 0 : index
        %c0_33 = arith.constant 0 : index
        %52 = vector.load %arg12[%c0_32, %c0_33] : memref<2x128xf32, #tpu.memory_space<vmem>>, vector<1x128xf32>
        tpu.vector_store %arg12[%c0_32, %c0_33], %51 {strides = array<i32>} : memref<2x128xf32, #tpu.memory_space<vmem>>, vector<1x128xf32>,
        %c0_34 = arith.constant 0 : index
        %c0_35 = arith.constant 0 : index
        %53 = vector.load %arg7[%c0_34, %c0_35] : memref<1x128xf32, #tpu.memory_space<vmem>>, vector<1x128xf32>
        %54 = arith.mulf %41, %51 : vector<1x128xf32>
        %55 = arith.subf %53, %54 : vector<1x128xf32>
        %c1_36 = arith.constant 1 : index
        %c0_37 = arith.constant 0 : index
        %56 = vector.load %arg12[%c1_36, %c0_37] : memref<2x128xf32, #tpu.memory_space<vmem>>, vector<1x128xf32>
        tpu.vector_store %arg12[%c1_36, %c0_37], %55 {strides = array<i32>} : memref<2x128xf32, #tpu.memory_space<vmem>>, vector<1x128xf32>,
      } else {
      }
    } else {
    }
    %c1_i32 = arith.constant 1 : i32
    %11 = arith.cmpi eq, %arg0, %c1_i32 : i32
    %12 = arith.extui %11 : i1 to i32
    %c0_i32_8 = arith.constant 0 : i32
    %13 = arith.cmpi ne, %12, %c0_i32_8 : i32
    scf.if %13 {
      %c0_9 = arith.constant 0 : index
      %c0_10 = arith.constant 0 : index
      %14 = vector.load %arg12[%c0_9, %c0_10] : memref<2x128xf32, #tpu.memory_space<vmem>>, vector<1x128xf32>
      %15 = vector.broadcast %14 : vector<1x128xf32> to vector<8x128xf32>
      %16 = arith.mulf %7, %15 : vector<8x128xf32>
      %c1 = arith.constant 1 : index
      %c0_11 = arith.constant 0 : index
      %17 = vector.load %arg12[%c1, %c0_11] : memref<2x128xf32, #tpu.memory_space<vmem>>, vector<1x128xf32>
      %18 = vector.broadcast %17 : vector<1x128xf32> to vector<8x128xf32>
      %19 = arith.addf %16, %18 : vector<8x128xf32>
      %c0_12 = arith.constant 0 : index
      %c0_13 = arith.constant 0 : index
      %20 = vector.load %arg8[%c0_12, %c0_13] : memref<128x128xf32, #tpu.memory_space<vmem>>, vector<128x128xf32>
      %cst_14 = arith.constant dense<0.000000e+00> : vector<8x128xf32>
      %21 = tpu.matmul %19, %20, %cst_14 {dimension_numbers = #tpu.dot_dimension_numbers<[1], [0], [0], [1], [0, 0, 1, 1], [], []>} : vector<8x128xf32>, vector<128x128xf32>, vector<8x128xf32> -> vector<8x128xf32>
      %c0_15 = arith.constant 0 : index
      %c0_16 = arith.constant 0 : index
      %22 = vector.load %arg9[%c0_15, %c0_16] : memref<1x128xf32, #tpu.memory_space<vmem>>, vector<1x128xf32>
      %23 = vector.broadcast %22 : vector<1x128xf32> to vector<8x128xf32>
      %24 = arith.addf %21, %23 : vector<8x128xf32>
      %25 = arith.negf %24 : vector<8x128xf32>
      %26 = math.exp %25 : vector<8x128xf32>
      %cst_17 = arith.constant 1.000000e+00 : f32
      %27 = vector.broadcast %cst_17 : f32 to vector<8x128xf32>
      %28 = arith.addf %27, %26 : vector<8x128xf32>
      %29 = arith.divf %27, %28 : vector<8x128xf32>
      %c0_18 = arith.constant 0 : index
      %c0_19 = arith.constant 0 : index
      %30 = vector.load %arg10[%c0_18, %c0_19] : memref<8x128xf32, #tpu.memory_space<vmem>>, vector<8x128xf32>
      tpu.vector_store %arg10[%c0_18, %c0_19], %29 {strides = array<i32>} : memref<8x128xf32, #tpu.memory_space<vmem>>, vector<8x128xf32>,
    } else {
    }
    return
  }
  func.func @transform_0(%arg0: i32, %arg1: i32) -> (i32, i32) {
    %c0_i32 = arith.constant 0 : i32
    %c0_i32_0 = arith.constant 0 : i32
    return %arg1, %c0_i32 : i32, i32
  }
  func.func @transform_1(%arg0: i32, %arg1: i32) -> (i32, i32) {
    %c0_i32 = arith.constant 0 : i32
    %c0_i32_0 = arith.constant 0 : i32
    return %arg1, %c0_i32 : i32, i32
  }
  func.func @transform_2(%arg0: i32, %arg1: i32) -> (i32, i32) {
    %c0_i32 = arith.constant 0 : i32
    %c0_i32_0 = arith.constant 0 : i32
    %c0_i32_1 = arith.constant 0 : i32
    return %c0_i32, %c0_i32_0 : i32, i32
  }
  func.func @transform_3(%arg0: i32, %arg1: i32) -> (i32, i32) {
    %c0_i32 = arith.constant 0 : i32
    %c0_i32_0 = arith.constant 0 : i32
    %c0_i32_1 = arith.constant 0 : i32
    return %c0_i32, %c0_i32_0 : i32, i32
  }
  func.func @transform_4(%arg0: i32, %arg1: i32) -> (i32, i32) {
    %c0_i32 = arith.constant 0 : i32
    %c0_i32_0 = arith.constant 0 : i32
    %c0_i32_1 = arith.constant 0 : i32
    return %c0_i32, %c0_i32_0 : i32, i32
  }
  func.func @transform_5(%arg0: i32, %arg1: i32) -> (i32, i32) {
    %c0_i32 = arith.constant 0 : i32
    %c0_i32_0 = arith.constant 0 : i32
    %c0_i32_1 = arith.constant 0 : i32
    return %c0_i32, %c0_i32_0 : i32, i32
  }
  func.func @transform_6(%arg0: i32, %arg1: i32) -> (i32, i32) {
    %c0_i32 = arith.constant 0 : i32
    %c0_i32_0 = arith.constant 0 : i32
    %c0_i32_1 = arith.constant 0 : i32
    return %c0_i32, %c0_i32_0 : i32, i32
  }
  func.func @transform_7(%arg0: i32, %arg1: i32) -> (i32, i32) {
    %c0_i32 = arith.constant 0 : i32
    %c0_i32_0 = arith.constant 0 : i32
    %c0_i32_1 = arith.constant 0 : i32
    return %c0_i32, %c0_i32_0 : i32, i32
  }
  func.func @transform_8(%arg0: i32, %arg1: i32) -> (i32, i32) {
    %0 = arith.muli %arg1, %arg0 : i32
    %c0_i32 = arith.constant 0 : i32
    %c0_i32_0 = arith.constant 0 : i32
    return %0, %c0_i32 : i32, i32
  }
}

</mosaic_0001>

<bundles_post_ra>
// kernel: tpu_custom_call.1
= control target key start
LH: loop header
LB: loop body
LE: loop exit
PB: predicated region body
PF: predicated region fallthrough
CT: control target
= control target key end

     0   :  { %s1443_s0 = inlined_call_operand.hbm [shape: f32[16,32], index: 0, kind: input, shape index: {}]   ;;  %s1444_s1 = inlined_call_operand.hbm [shape: f32[16,32], index: 1, kind: input, shape index: {}]   ;;  %s1445_s2 = inlined_call_operand.hbm [shape: f32[32,96], index: 2, kind: input, shape index: {}]   ;;  %s1446_s3 = inlined_call_operand.vmem [shape: f32[1,96], index: 3, kind: input, shape index: {}]   ;;  %s1447_s4 = inlined_call_operand.vmem [shape: f32[1,128], index: 4, kind: input, shape index: {}]   ;;  %s1448_s5 = inlined_call_operand.vmem [shape: f32[1,128], index: 5, kind: input, shape index: {}]   ;;  %s1449_s6 = inlined_call_operand.hbm [shape: f32[128,128], index: 6, kind: input, shape index: {}]   ;;  %s1450_s7 = inlined_call_operand.vmem [shape: f32[1,128], index: 7, kind: input, shape index: {}]   ;;  %s1451_s8 = inlined_call_operand.hbm [shape: f32[16,128], index: 8, kind: output, shape index: {}]  }
   0x1   :  { %1461 = sst [smem:[#allocation26_spill]] %s1445_s2 }
   0x2   :  { %1462 = sst [smem:[#allocation27_spill]] %s1447_s4 }
   0x3   :  { %1463 = sst [smem:[#allocation28_spill]] %s1448_s5 }
   0x4   :  { %1464 = sst [smem:[#allocation29_spill]] %s1449_s6 }
   0x5   :  { %1465 = sst [smem:[#allocation30_spill]] %s1450_s7 }
   0x6   :  { %1466 = sst [smem:[#allocation31_spill]] %s1451_s8 }
   0x7   :  { %13 = vsyncpa [#allocation5], 0 }
   0x8   :  { %15 = vsyncpa [#allocation5 + $0x1], 0 }
   0x9   :  { %16 = vsyncpa [#allocation8], 0 }
   0xa   :  { %18 = vsyncpa [#allocation8 + $0x1], 0 }
   0xb   :  { %19 = vsyncpa [#allocation11], 0 }
   0xc   :  { %20 = vsyncpa [#allocation6], 0 }
   0xd   :  { %22 = vsyncpa [#allocation6 + $0x1], 0  ;;  %s1199_s27 = smov 0   ;;  %s1201_s28 = smov 0  }
   0xe   :  { %s1203_s29 = smov 0   ;;  %s1205_s30 = smov 0  }
   0xf   :  { %s1207_s9 = smov 0   ;;  %s1209_s10 = smov 0  }
  0x10   :  { %s1211_s11 = smov 0   ;;  %s1213_s12 = smov 0  }
  0x11   :  { %s1215_s13 = smov 0   ;;  %s1217_s14 = smov 0  }
  0x12   :  { %s1219_s15 = smov 0  }
  0x13 LB: > { %1467 = sst [smem:[#allocation18_spill]] %s1106_s27  ;;  %s1255_s16 = sadd.s32 4294967295, %s1146_s15   ;;  %s1146_s15 = sphi %s1219_s15, %s28_s15   ;;  %s1142_s14 = sphi %s1217_s14, %s1493_s14   ;;  %s1138_s13 = sphi %s1215_s13, %s1492_s13   ;;  %s1134_s12 = sphi %s1213_s12, %s1491_s12   ;;  %s1130_s11 = sphi %s1211_s11, %s1490_s11   ;;  %s1126_s10 = sphi %s1209_s10, %s1499_s10   ;;  %s1122_s9 = sphi %s1207_s9, %s1498_s9   ;;  %s1118_s30 = sphi %s1205_s30, %s1497_s30   ;;  %s1114_s29 = sphi %s1203_s29, %s1496_s29   ;;  %s1110_s28 = sphi %s1201_s28, %s1495_s28   ;;  %s1106_s27 = sphi %s1199_s27, %s1494_s27  }
  0x14   : > { %1468 = sst [smem:[#allocation19_spill]] %s1138_s13  ;;  %s724_s17 = sadd.s32 4294967294, %s1146_s15  }
  0x15   : > { %1469 = sst [smem:[#allocation20_spill]] %s1142_s14  ;;  %p61_p0 = scmp.eq.s32.totalorder %s1255_s16, 0 }
  0x16   : > { %p237_p1 = scmp.ne.s32.totalorder %s1114_s29, %s1110_s28  ;;  %p238_p2 = scmp.eq.s32.totalorder %s1255_s16, 3 }
  0x17   : > { %p243_p3 = scmp.ne.s32.totalorder %s1110_s28, %s1106_s27  ;;  %p244_p4 = scmp.eq.s32.totalorder %s724_s17, 3 }
  0x18   : > { %p725_p5 = scmp.ge.s32.totalorder %s1146_s15, 1  ;;  %p1265_p6 = por %p238_p2, %p237_p1 }
  0x19   : > { %p251_p7 = scmp.lt.s32.totalorder %s1146_s15, 5  ;;  %p1270_p8 = por %p244_p4, %p243_p3 }
  0x1a   : > { %s1470_s18 = scalar_select %p1265_p6, 1, 0 }
  0x1b   : > { %s1472_s19 = scalar_select %p1270_p8, 1, 0 }
  0x1c   : > { %1471 = sst [smem:[#allocation21_spill]] %s1470_s18  ;;  %p1274_p9 = pnand %p725_p5, %p251_p7 }
  0x1d   : > { %1473 = sst [smem:[#allocation22_spill]] %s1472_s19  ;;  %s1148_s24 = smov [#allocation9]  }
  0x1e   : > { %s1475_s2 = sld [smem:[#allocation26_spill]]  ;;  %p764_p10 = pneg %p1274_p9 }
  0x1f   : > { %s264_s25 = sshll.u32 %s1148_s24, 4  ;;  %s1476_s6 = sld [smem:[#allocation29_spill]]  ;;  %s265_s25 = int_to_ptr.vmem [resolvable:$true] %s264_s25 }
  0x20   : > { %p765_p11 = pnand %p764_p10, %p61_p0  ;;  %s1149_s22 = smov 128  }
  0x21   : > { %s1151_s19 = smov [#allocation10]   ;;  %s37_s27 = sadd.s32 1, %s1138_s13 }
  0x22   : > { %s287_s24 = sshll.u32 %s1151_s19, 4  ;;  %p38_p12 = scmp.ge.s32.totalorder %s37_s27, 2  ;;  %s288_s24 = int_to_ptr.vmem [resolvable:$true] %s287_s24 }
  0x23   : > { %s40_s26 = sadd.s32 1, %s1142_s14  ;;  %s47_s17 = sadd.s32 1, %s1126_s10 }
  0x24   : > { %s262_s23 = sshll.u32 %s1475_s2, 4  ;;  %s1150_s2 = smov 8   ;;  %s263_s23 = int_to_ptr.hbm [resolvable:$true] %s262_s23 }
  0x25   : > { %s285_s21 = sshll.u32 %s1476_s6, 4  ;;  %p54_p13 = scmp.ne.s32.totalorder %s1126_s10, %s1122_s9  ;;  %s286_s21 = int_to_ptr.hbm [resolvable:$true] %s285_s21 }
  0x26   : > { %767 = dma.hbm_to_vmem [thread:$0]  (!%p765_p11), %s263_s23, 512, %s265_s25, [#allocation8], %s1149_s22, %s1149_s22, %s1150_s2  }
  0x27   : > { %770 = dma.hbm_to_vmem [thread:$0]  (!%p765_p11), %s286_s21, 2048, %s288_s24, [#allocation11], %s1149_s22, %s1149_s22, %s1150_s2  }
  0x28   : > { %s1501_s27 = smov (%p38_p12, %s37_s27), 0  ;;  %s1503_s26 = smov (!%p38_p12, %s40_s26), %s1142_s14 }
  0x29   : > { %1477 = sst [smem:[#allocation23_spill]] %s1501_s27  ;;  %s44_s19 = ssub.s32 %s1138_s13, %s1501_s27 }
  0x2a   : > { %p55_p1 = scmp.eq.s32.totalorder %s1146_s15, 0  ;;  %p42_p2 = scmp.ge.s32.totalorder %s1503_s26, 2 }
  0x2b   : > { %p45_p3 = scmp.eq.s32.totalorder %s44_s19, 0  ;;  %p60_p5 = scmp.ne.s32.totalorder %s1122_s9, %s1118_s30 }
  0x2c   : > { %p1299_p4 = por %p55_p1, %p54_p13  ;;  %s1505_s26 = smov (%p42_p2, %s1503_s26), 0 }
  0x2d   : > { %1479 = sst [smem:[#allocation24_spill]] %s1505_s26  ;;  %p1312_p7 = por %p61_p0, %p60_p5 }
  0x2e   : > { %s1308_s23 = scalar_select %p45_p3, %s1126_s10, %s47_s17  }
  0x2f   : > { %s222_s21 = smul.u32 %s1138_s13, %s1142_s14  ;;  %s227_s24 = sadd.s32 1, %s1114_s29 }
  0x30   : > { %1480 = sst [smem:[#allocation25_spill]] %s1308_s23  ;;  %s223_s22 = smul.u32 %s1505_s26, %s1501_s27 }
  0x31   : > { %p784_p10 = scmp.lt.s32.totalorder %s1146_s15, 4  ;;  %s304_s19 = sand.u32 1, %s1126_s10  }
  0x32   : > { %s224_s6 = ssub.s32 %s222_s21, %s223_s22  ;;  %s729_s30 = sshll.u32 %s304_s19, 3 }
  0x33   : > { %p225_p11 = scmp.eq.s32.totalorder %s224_s6, 0  ;;  %s730_s8 = sshll.u32 %s1138_s13, 3 }
  0x34   : > { %s312_s7 = scalar_lea.hbm %s1443_s0, %s730_s8  ;;  %s308_s5 = scalar_lea.vmem [#allocation4], %s729_s30 }
  0x35   : > { %s1325_s18 = scalar_select %p225_p11, %s1114_s29, %s227_s24  }
  0x36   : > { %s316_s4 = sshll.u32 %s308_s5, 4  ;;  %s314_s14 = sshll.u32 %s312_s7, 4  ;;  %s317_s4 = int_to_ptr.vmem [resolvable:$true] %s316_s4  ;;  %s315_s14 = int_to_ptr.hbm [resolvable:$true] %s314_s14 }
  0x37   : > { %p772_p12 = pnand %p784_p10, %p1299_p4  ;;  %s331_s6 = scalar_lea.hbm %s1444_s1, %s730_s8 }
  0x38   : > { %s323_s21 = sand.u32 1, %s1146_s15   ;;  %s305_s22 = scalar_lea.sflag [#allocation5], %s304_s19 }
  0x39   : > { %774 = dma.hbm_to_vmem [thread:$0]  (!%p772_p12), %s315_s14, 128, %s317_s4, %s305_s22  }
  0x3a   : > { %s333_s24 = sshll.u32 %s331_s6, 4  ;;  %s327_s13 = scalar_lea.vmem [#allocation7], %s729_s30  ;;  %s334_s24 = int_to_ptr.hbm [resolvable:$true] %s333_s24 }
  0x3b   : > { %s335_s23 = sshll.u32 %s327_s13, 4  ;;  %s324_s17 = scalar_lea.sflag [#allocation8], %s323_s21  ;;  %s336_s23 = int_to_ptr.vmem [resolvable:$true] %s335_s23 }
  0x3c   : > { %777 = dma.hbm_to_vmem [thread:$0]  (!%p772_p12), %s334_s24, 128, %s336_s23, %s324_s17  }
  0x3d   : > { %344 = sbr.rel (%p1274_p9) target bundleno = 498 (0x1f2), region = 52  ;;  %s346_s5 = sand.u32 (!%p1274_p9), 1, %s1122_s9  }
  0x3e   : > { %s734_s7 = sshll.u32 (!%p1274_p9), %s346_s5, 3  ;;  %s347_s2 = scalar_lea.sflag (!%p1274_p9), [#allocation5], %s346_s5 }
  0x3f   : > { %s350_s27 = scalar_lea.vmem (!%p1274_p9), [#allocation4], %s734_s7 }
  0x42   : > { %1085 = dma.done.wait (%p1312_p7), %s347_s2, 128  }
  0x43   : > { %1087 = vsyncadd (%p1312_p7), %s347_s2, 4294967168  ;;  %s356_s4 = sand.u32 1, %s1255_s16   ;;  %s360_s13 = scalar_lea.vmem [#allocation7], %s734_s7 }
  0x44   : > { %s357_s8 = scalar_lea.sflag [#allocation8], %s356_s4 }
  0x45   : > { %1089 = dma.done.wait (%p1312_p7), %s357_s8, 128  }
  0x46   : > { %1091 = vsyncadd (%p1312_p7), %s357_s8, 4294967168 }
  0x47   : > { %1093 = dma.done.wait (%p61_p0), [#allocation8], 512  }
  0x48   : > { %1095 = vsyncadd (%p61_p0), [#allocation8], 4294966784 }
  0x49   : > { %1097 = dma.done.wait (%p61_p0), [#allocation11], 2048  }
  0x4a   : > { %1099 = vsyncadd (%p61_p0), [#allocation11], 4294965248  ;;  %s406_s14 = sand.u32 1, %s1110_s28   ;;  %v414_v0 = vld [vmem:[#allocation9 + $0x18] sm:$0xff]  ;;  %v413_v1 = vld [vmem:[#allocation9 + $0x10] sm:$0xff]  ;;  %s1152_s26 = smov 96  }
  0x4b   : > { %s1361_s20 = sshll.u32 %s406_s14, 3  ;;  %435 = vmatpush.msra.mxu0 %v414_v0  ;;  %v443_v2 = vld [vmem:[%s360_s13] sm:$0xff]  ;;  %v412_v3 = vld [vmem:[#allocation9 + $0x8] sm:$0xff]  ;;  %v411_v4 = vld [vmem:[#allocation9] sm:$0xff]  ;;  %vm419_vm0 = vcmask 261120   ;;  %vm448_vm1 = vcmask 785408  }
  0x4c   : > { %445 = vrot.lane.b32.xlu0 %v443_v2, %s1152_s26  ;;  %v410_v5 = vld [vmem:[%s350_s27] sm:$0xff]  ;;  %v882_v6 = vld [vmem:[%s1446_s3] ss:$0 sm:$0xff]  ;;  %s408_s19 = scalar_lea.vmem [#allocation12], %s1361_s20  ;;  %p740_p0 = scmp.ne.s32.totalorder %s1134_s12, 0 }
  0x4d   : > { %436 = vmatpush.msra.mxu0 %v413_v1  ;;  %p741_p9 = scmp.ne.s32.totalorder (!%p740_p0), %s1130_s11, 0 }
  0x4f   : > { %437 = vmatpush.msra.mxu0 %v412_v3 }
  0x51   : > { %438 = vmatpush.msra.mxu0 %v411_v4 }
  0x52   : > { %739 = vmatmul.msk.f32.vlgmr.msra.gmra.mxu0 %vm419_vm0, %v410_v5 }
  0xbe   : > { %v446_v8 = vpop.permute.xlu0 %445 }
  0xce   : > { %453 = sbr.rel (%p740_p0) target bundleno = 281 (0x119), region = 72 }
  0xcf   : > { %v440_v7 = vpop.f32.mrf.mxu0 }
  0xd0   : > { %v441_v9 = vadd.f32 %v882_v6, %v440_v7 }
  0xd2   : > { %v1366_v10 = vsel %vm448_vm1, %v441_v9, %v446_v8 }
  0xd3   : > { %457 = sbr.rel (%p741_p9) target bundleno = 218 (0xda), region = 76 }
  0xd8   : > { %v1153_v11 = vmov 0.0  }
  0xd9   : > { %458 = vst [vmem:[#allocation2] sm:$0x3] %v1153_v11 }
  0xda PF: > { %v459_v12 = vlaneseq  ;;  %s742_s30 = sshll.u32 %s1130_s11, 3  ;;  %p743_p13 = scmp.ne.s32.totalorder %s1130_s11, 1 }
  0xdb   : > { %v462_v13 = vstv %s742_s30  ;;  %s1482_s22 = sld [smem:[#allocation27_spill]] (!%p743_p13) }
  0xdc   : > { %v460_v14 = vshrl.u32 %v459_v12, 7  ;;  %s1483_s17 = sld [smem:[#allocation28_spill]] (!%p743_p13) }
  0xde   : > { %v463_v15 = vadd.s32 %v462_v13, %v460_v14 }
  0xe0   : > { %vm464_vm2 = vcmp.lt.s32.totalorder %v463_v15, 16  ;;  %v466_v27 = vld [vmem:[#allocation2] sm:$0x1]  ;;  %v475_v30 = vld [vmem:[#allocation2 + $0x1] sm:$0x1] }
  0xe1   : > { %v465_v16 = vsel %vm464_vm2, %v1366_v10, 0.0 }
  0xe2   : > { %v467_v17 = vrot.slane %v465_v16, 4  ;;  %v476_v18 = vmul.f32 %v465_v16, %v465_v16 }
  0xe4   : > { %v468_v19 = vadd.f32 %v467_v17, %v465_v16  ;;  %v477_v20 = vrot.slane %v476_v18, 4 }
  0xe6   : > { %v469_v21 = vrot.slane %v468_v19, 2  ;;  %v478_v22 = vadd.f32 %v477_v20, %v476_v18 }
  0xe8   : > { %v470_v23 = vadd.f32 %v469_v21, %v468_v19  ;;  %v479_v24 = vrot.slane %v478_v22, 2 }
  0xea   : > { %v471_v25 = vrot.slane %v470_v23, 1  ;;  %v480_v26 = vadd.f32 %v479_v24, %v478_v22 }
  0xec   : > { %v472_v28 = vadd.f32 %v471_v25, %v470_v23  ;;  %v481_v29 = vrot.slane %v480_v26, 1 }
  0xee   : > { %v473_v31 = vadd.f32 %v472_v28, %v466_v27  ;;  %v482_v32 = vadd.f32 %v481_v29, %v480_v26  ;;  %488 = sbr.rel (%p743_p13) target bundleno = 281 (0x119), region = 80 }
  0xf0   : > { %474 = vst [vmem:[#allocation2] sm:$0x1] %v473_v31  ;;  %v483_v33 = vadd.f32 %v482_v32, %v475_v30 }
  0xf2   : > { %484 = vst [vmem:[#allocation2 + $0x1] sm:$0x1] %v483_v33 }
  0xf3   : > { %v506_v47 = vld [vmem:[%s1482_s22] sm:$0x1] }
  0xf4   : > { %v509_v50 = vld [vmem:[%s1483_s17] sm:$0x1] }
  0xf7   : > { %v489_v34 = vld [vmem:[#allocation2] sm:$0x1] }
  0xf8   : > { %v490_v36 = vmul.f32 0.0625, %v489_v34 }
  0xf9   : > { %v491_v35 = vld [vmem:[#allocation2 + $0x1] sm:$0x1] }
  0xfa   : > { %v492_v37 = vmul.f32 0.0625, %v491_v35  ;;  %v493_v38 = vmul.f32 %v490_v36, %v490_v36 }
  0xfc   : > { %v494_v39 = vsub.f32 %v492_v37, %v493_v38 }
  0xfe   : > { %v495_v40 = vadd.f32 1e-05, %v494_v39 }
 0x100   : > { %883 = vrsqrt.f32 %v495_v40  ;;  %vm502_vm3 = vweird.f32 %v495_v40 }
 0x106   : > { %v884_v41 = vpop.eup %883 }
 0x107   : > { %v497_v42 = vmul.f32 %v884_v41, %v495_v40  ;;  %vm503_vm4 = vweird.f32 %v884_v41 }
 0x108   : > { %vm504_vm5 = vmor %vm502_vm3, %vm503_vm4 }
 0x109   : > { %v498_v43 = vmul.f32 %v884_v41, %v497_v42 }
 0x10b   : > { %v499_v44 = vmul.f32 0.5, %v498_v43 }
 0x10d   : > { %v500_v45 = vsub.f32 1.5, %v499_v44 }
 0x10f   : > { %v501_v46 = vmul.f32 %v884_v41, %v500_v45 }
 0x111   : > { %v505_v48 = vsel %vm504_vm5, %v884_v41, %v501_v46 }
 0x112   : > { %v507_v49 = vmul.f32 %v506_v47, %v505_v48 }
 0x114   : > { %508 = vst [vmem:[#allocation3] sm:$0x1] %v507_v49  ;;  %v510_v51 = vmul.f32 %v507_v49, %v490_v36 }
 0x116   : > { %v511_v52 = vsub.f32 %v509_v50, %v510_v51 }
 0x118   : > { %512 = vst [vmem:[#allocation3 + $0x1] sm:$0x1] %v511_v52 }
 0x119 PF: > { %p744_p1 = scmp.ne.s32.totalorder %s1134_s12, 1 }
 0x11a   : > { %s1484_s2 = sld [smem:[#allocation30_spill]] (!%p744_p1) }
 0x11b   : > { %516 = sbr.rel (%p744_p1) target bundleno = 477 (0x1dd), region = 84 }
 0x120   : > { %v538_v53 = vld [vmem:[#allocation10 + $0x78] sm:$0xff]  ;;  %v537_v54 = vld [vmem:[#allocation10 + $0x70] sm:$0xff]  ;;  %v536_v55 = vld [vmem:[#allocation10 + $0x68] sm:$0xff] }
 0x121   : > { %543 = vmatpush.msra.mxu0 %v538_v53  ;;  %v535_v56 = vld [vmem:[#allocation10 + $0x60] sm:$0xff]  ;;  %v534_v57 = vld [vmem:[#allocation10 + $0x58] sm:$0xff]  ;;  %v533_v58 = vld [vmem:[#allocation10 + $0x50] sm:$0xff] }
 0x122   : > { %v532_v59 = vld [vmem:[#allocation10 + $0x48] sm:$0xff]  ;;  %v531_v60 = vld [vmem:[#allocation10 + $0x40] sm:$0xff]  ;;  %v530_v61 = vld [vmem:[#allocation10 + $0x38] sm:$0xff] }
 0x123   : > { %544 = vmatpush.msra.mxu0 %v537_v54  ;;  %v529_v62 = vld [vmem:[#allocation10 + $0x30] sm:$0xff]  ;;  %v528_v63 = vld [vmem:[#allocation10 + $0x28] sm:$0xff]  ;;  %v527_v0 = vld [vmem:[#allocation10 + $0x20] sm:$0xff] }
 0x124   : > { %v885_v1 = vld [vmem:[#allocation3] ss:$0 sm:$0xff]  ;;  %v525_v3 = vld [vmem:[#allocation10 + $0x10] sm:$0xff]  ;;  %v886_v5 = vld [vmem:[#allocation3 + $0x1] ss:$0 sm:$0xff] }
 0x125   : > { %545 = vmatpush.msra.mxu0 %v536_v55  ;;  %v526_v2 = vld [vmem:[#allocation10 + $0x18] sm:$0xff]  ;;  %v519_v4 = vmul.f32 %v885_v1, %v1366_v10  ;;  %v524_v6 = vld [vmem:[#allocation10 + $0x8] sm:$0xff]  ;;  %v523_v7 = vld [vmem:[#allocation10] sm:$0xff] }
 0x126   : > { %v887_v9 = vld [vmem:[%s1484_s2] ss:$0 sm:$0xff] }
 0x127   : > { %546 = vmatpush.msra.mxu0 %v535_v56  ;;  %v522_v8 = vadd.f32 %v886_v5, %v519_v4 }
 0x129   : > { %547 = vmatpush.msra.mxu0 %v534_v57 }
 0x12b   : > { %548 = vmatpush.msra.mxu0 %v533_v58 }
 0x12d   : > { %549 = vmatpush.msra.mxu0 %v532_v59 }
 0x12f   : > { %550 = vmatpush.msra.mxu0 %v531_v60 }
 0x131   : > { %551 = vmatpush.msra.mxu0 %v530_v61 }
 0x133   : > { %552 = vmatpush.msra.mxu0 %v529_v62 }
 0x135   : > { %553 = vmatpush.msra.mxu0 %v528_v63 }
 0x137   : > { %554 = vmatpush.msra.mxu0 %v527_v0 }
 0x139   : > { %555 = vmatpush.msra.mxu0 %v526_v2 }
 0x13b   : > { %556 = vmatpush.msra.mxu0 %v525_v3 }
 0x13d   : > { %557 = vmatpush.msra.mxu0 %v524_v6 }
 0x13f   : > { %558 = vmatpush.msra.mxu0 %v523_v7 }
 0x140   : > { %559 = vmatmul.f32.vlgmr.msra.gmra.mxu0 %v522_v8 }
 0x1bd   : > { %v560_v11 = vpop.f32.mrf.mxu0 }
 0x1be   : > { %v561_v12 = vadd.f32 %v887_v9, %v560_v11 }
 0x1c0   : > { %v745_v13 = vmul.f32 -1.442695, %v561_v12 }
 0x1c2   : > { %888 = vpow2.f32 %v745_v13 }
 0x1c8   : > { %v889_v14 = vpop.eup %888 }
 0x1c9   : > { %v566_v15 = vadd.f32 1.0, %v889_v14 }
 0x1cb   : > { %890 = vrcp.f32 %v566_v15  ;;  %v578_v18 = vand.u32 2147483648, %v566_v15  ;;  %v576_v20 = vand.u32 2147483647, %v566_v15  ;;  %vm572_vm7 = vweird.f32 %v566_v15 }
 0x1cd   : > { %v579_v22 = vor.u32 1.1754944e-38, %v578_v18  ;;  %vm577_vm9 = vcmp.eq.f32.partialorder %v576_v20, 8.507059e+37 }
 0x1d1   : > { %v891_v10 = vpop.eup %890 }
 0x1d2   : > { %v568_v16 = vmul.f32 %v891_v10, %v566_v15  ;;  %vm573_vm6 = vweird.f32 %v891_v10 }
 0x1d3   : > { %vm574_vm8 = vmor %vm572_vm7, %vm573_vm6 }
 0x1d4   : > { %v569_v17 = vsub.f32 1.0, %v568_v16 }
 0x1d6   : > { %v570_v19 = vmul.f32 %v891_v10, %v569_v17 }
 0x1d8   : > { %v571_v21 = vadd.f32 %v891_v10, %v570_v19 }
 0x1da   : > { %v575_v23 = vsel %vm574_vm8, %v891_v10, %v571_v21 }
 0x1db   : > { %v580_v24 = vsel %vm577_vm9, %v579_v22, %v575_v23 }
 0x1dc   : > { %582 = vst [vmem:[%s408_s19] sm:$0xff] %v580_v24 }
 0x1dd PF: > { %s591_s4 = smul.u32 %s1130_s11, %s1134_s12  ;;  %s597_s8 = sshll.u32 %s408_s19, 4  ;;  %s598_s8 = int_to_ptr.vmem [resolvable:$true] %s597_s8 }
 0x1de   : > { %s1486_s25 = sld [smem:[#allocation31_spill]]  ;;  %s584_s21 = scalar_lea.sflag [#allocation6], %s406_s14 }
 0x1df   : > { %s747_s13 = sshll.u32 %s591_s4, 3 }
 0x1e4   : > { %s595_s30 = scalar_lea.hbm %s1486_s25, %s747_s13  ;;  %s1032_s20 = scalar_lea.hbm %s1486_s25, 16 }
 0x1e5   : > { %s599_s6 = sshll.u32 %s595_s30, 4  ;;  %s600_s6 = int_to_ptr.hbm [resolvable:$true] %s599_s6 }
 0x1e6   : > { %s1026_s22 = sshra.s32 %s600_s6, 4  ;;  %s1027_s22 = int_to_ptr.hbm [resolvable:$true] %s1026_s22 }
 0x1e7   : > { %s1028_s24 = scalar_lea.hbm %s1027_s22, 8  ;;  %p1033_p5 = scmp.lt.s32.totalorder %s1027_s22, %s1486_s25 }
 0x1e8   : > { %p1029_p2 = scmp.ne.s32.totalorder %s1027_s22, %s1028_s24  ;;  %p1034_p7 = scmp.lt.s32.totalorder %s1032_s20, %s1028_s24 }
 0x1ea   : > { %p1030_p3 = pnand %p1029_p2, %p1265_p6  ;;  %p1035_p10 = por %p1034_p7, %p1033_p5 }
 0x1ec   : > { %p1031_p4 = pneg %p1030_p3 }
 0x1ee   : > { %p1036_p11 = pnand %p1035_p10, %p1031_p4 }
 0x1f0   : > { %1039 = shalt.err (!%p1036_p11)
}
 0x1f1   : > { %762 = dma.vmem_to_hbm [thread:$0]  (%p1265_p6), %s598_s8, 128, %s600_s6, %s584_s21  }
 0x1f2 PF: > { %s1487_s14 = sld [smem:[#allocation18_spill]]  ;;  %p787_p12 = scmp.ge.s32.totalorder %s1146_s15, 2 }
 0x1f4   : > { %p779_p0 = pnand %p787_p12, %p1270_p8 }
 0x1f6   : > { %p780_p9 = pneg %p779_p0 }
 0x1f8   : > { %s611_s5 = sand.u32 1, %s1487_s14  }
 0x1f9   : > { %s612_s7 = scalar_lea.sflag [#allocation6], %s611_s5 }
 0x1fa   : > { %1101 = dma.done.wait (%p780_p9), %s612_s7, 128  }
 0x1fb   : > { %1103 = vsyncadd (%p780_p9), %s612_s7, 4294967168  ;;  %s28_s15 = sadd.s32 1, %s1146_s15   ;;  %s1489_s2 = sld [smem:[#allocation25_spill]] }
 0x1fc   : > { %p25_p13 = scmp.ge.s32.totalorder %s28_s15, 6   ;;  %s1490_s11 = sld [smem:[#allocation19_spill]] }
 0x1fd   : > { %s1491_s12 = sld [smem:[#allocation20_spill]]  ;;  %s1494_s27 = smov %s1110_s28 }
 0x1fe   : > { %s1492_s13 = sld [smem:[#allocation23_spill]]  ;;  %s1495_s28 = smov %s1114_s29 }
 0x1ff   : > { %s1493_s14 = sld [smem:[#allocation24_spill]]  ;;  %s1496_s29 = smov %s1325_s18 }
 0x200   : > { %s1497_s30 = smov %s1122_s9  ;;  %s1498_s9 = smov %s1126_s10 }
 0x201   : > { %s1499_s10 = smov %s1489_s2  ;;  %27 = sbr.rel (!%p25_p13) target bundleno = 19 (0x13), region = 134 }
 0x206   :  { %618 = vsyncpa [#allocation5], 1 }
 0x207   :  { %620 = vsyncpa [#allocation5 + $0x1], 1 }
 0x208   :  { %621 = vsyncpa [#allocation8], 1 }
 0x209   :  { %623 = vsyncpa [#allocation8 + $0x1], 1 }
 0x20a   :  { %624 = vsyncpa [#allocation11], 1 }
 0x20b   :  { %625 = vsyncpa [#allocation6], 1 }
 0x20c   :  { %627 = vsyncpa [#allocation6 + $0x1], 1 }

</bundles_post_ra>
